<compile_context>
chip_gen: v6e
topology: v6e:2x2x1
jax: 0.10.0
libtpu: 0.0.40
codegen_flags: <defaults>
</compile_context>

<pallas_src>
import functools

import jax
import jax.numpy as jnp
from jax.experimental import pallas as pl
from jax.experimental.pallas import tpu as pltpu


def _policy_kernel(action_bound,
                   x_ref, w1_ref, b1_ref,
                   wh_ref, bh_ref,
                   eps_ref,
                   out_ref):
    # Shapes (batch on the lane axis):
    #   x_ref:   (state_dim, tm)          w1_ref: (hidden, state_dim)
    #   b1_ref:  (hidden, 1)              wh_ref: (2*action_dim, hidden)
    #   bh_ref:  (2*action_dim, 1)        eps_ref: (action_dim, tm)
    #   out_ref: (2*action_dim, tm)
    action_dim = eps_ref.shape[0]

    # fc1 + ReLU: (hidden, state_dim) @ (state_dim, tm) -> (hidden, tm).
    # The MXU is idle at this stage, so a tiny-K matmul is fine and keeps
    # VPU/XLU slots free for the EUP-heavy tail.
    h = jnp.dot(w1_ref[...], x_ref[...], preferred_element_type=jnp.float32)
    h = jnp.maximum(h + b1_ref[...], 0.0)

    # Fused mu/std head: (2*action_dim, hidden) @ (hidden, tm) -> (2*A, tm).
    head = jnp.dot(wh_ref[...], h, preferred_element_type=jnp.float32) + bh_ref[...]
    mu = head[:action_dim, :]
    pre = head[action_dim:, :]

    # softplus (numerically stable, matches F.softplus).
    std = jnp.maximum(pre, 0.0) + jnp.log1p(jnp.exp(-jnp.abs(pre)))

    # dist.rsample(): mu + std * eps.  Normal.log_prob(sample): by construction
    # (sample - mu)/std == eps, so the divide is eliminated.
    eps = eps_ref[...]
    sample = mu + std * eps
    log_prob = (-0.5 * jnp.square(eps)
                - jnp.log(std)
                - 0.5 * jnp.log(2.0 * jnp.pi))

    action = jnp.tanh(sample)
    # Faithful to the reference: it applies tanh to `action` again inside the
    # squash correction (log(1 - tanh(tanh(u))^2 + 1e-7)).
    t2 = jnp.tanh(action)
    log_prob = log_prob - jnp.log(1.0 - jnp.square(t2) + 1e-7)

    # Two plain sublane-sliced stores; the lane (batch) axis is fully dense.
    out_ref[:action_dim, :] = action * action_bound
    out_ref[action_dim:, :] = log_prob


def fuse_params(w1, b1, wmu, bmu, wstd, bstd):
    """One-time parameter repack: transpose + fuse the two head layers.

    Inputs use the "x @ W + b" convention:
      w1 (state_dim, hidden), b1 (1, hidden),
      wmu/wstd (hidden, action_dim), bmu/bstd (1, action_dim).
    """
    return {
        "w1t": jnp.asarray(w1).T,                                    # (hidden, state_dim)
        "b1t": jnp.asarray(b1).reshape(-1, 1),                       # (hidden, 1)
        "w_head_t": jnp.concatenate([wmu, wstd], axis=1).T,          # (2*A, hidden)
        "b_head_t": jnp.concatenate([bmu, bstd], axis=1).reshape(-1, 1),  # (2*A, 1)
    }


def _cdiv(a, b):
    return -(-a // b)


def _megacore_chip():
    """True on chips with >1 TensorCore sharing a grid (v4 / v5p / v7x)."""
    try:
        kind = jax.devices()[0].device_kind.lower()
    except Exception:
        return False
    if "lite" in kind:
        return False
    return ("v7" in kind) or ("v4" in kind) or ("v5p" in kind)


def policy_net_continuous(x, params, eps, action_bound, *, block_batch=2048):
    """PolicyNetContinuous forward pass as a Pallas TPU kernel.

    x:   (batch, state_dim) float32
    eps: (batch, action_dim) float32 standard-normal noise (rsample noise)
    Returns (action, log_prob), each (batch, action_dim) float32.
    """
    batch, state_dim = x.shape
    hidden = params["w1t"].shape[0]
    two_a = params["w_head_t"].shape[0]
    action_dim = two_a // 2
    assert eps.shape == (batch, action_dim)

    # ---- batch tiling: lane-dense tiles, padded to multiples of 128 ----
    lane = 128
    padded128 = _cdiv(batch, lane) * lane
    tm_cap = max(lane, (block_batch // lane) * lane)
    n_tiles = _cdiv(padded128, tm_cap)
    if _megacore_chip() and padded128 >= 2 * lane:
        n_tiles = max(n_tiles, 2)       # make the "parallel" axis shard across TCs
    tm = _cdiv(_cdiv(padded128, n_tiles), lane) * lane
    padded = n_tiles * tm

    # Transpose to batch-on-lane layout and zero-pad the ragged tail
    # (padded rows compute bias-only garbage that is sliced off below).
    xt = jnp.pad(x.T, ((0, 0), (0, padded - batch)))          # (state_dim, padded)
    epst = jnp.pad(eps.T, ((0, 0), (0, padded - batch)))      # (action_dim, padded)

    kernel = functools.partial(_policy_kernel, float(action_bound))

    flops = (2 * padded * state_dim * hidden
             + 2 * padded * hidden * two_a
             + 15 * padded * two_a)
    transcendentals = 6 * padded * action_dim
    bytes_accessed = 4 * (padded * (state_dim + action_dim + two_a)
                          + hidden * (state_dim + 1 + two_a) + two_a)

    packed = pl.pallas_call(
        kernel,
        out_shape=jax.ShapeDtypeStruct((two_a, padded), jnp.float32),
        grid_spec=pltpu.PrefetchScalarGridSpec(
            num_scalar_prefetch=0,
            grid=(n_tiles,),
            in_specs=[
                pl.BlockSpec((state_dim, tm), lambda i: (0, i)),     # x tile (lane-dense)
                pl.BlockSpec((hidden, state_dim), lambda i: (0, 0)),  # w1^T (resident)
                pl.BlockSpec((hidden, 1), lambda i: (0, 0)),          # b1 (resident)
                pl.BlockSpec((two_a, hidden), lambda i: (0, 0)),      # fused head W^T
                pl.BlockSpec((two_a, 1), lambda i: (0, 0)),           # fused head b
                pl.BlockSpec((action_dim, tm), lambda i: (0, i)),     # eps tile
            ],
            out_specs=pl.BlockSpec((two_a, tm), lambda i: (0, i)),    # packed out
        ),
        compiler_params=pltpu.CompilerParams(
            dimension_semantics=("parallel",)),
        cost_estimate=pl.CostEstimate(flops=int(flops),
                                      transcendentals=int(transcendentals),
                                      bytes_accessed=int(bytes_accessed)),
    )(xt, params["w1t"], params["b1t"],
      params["w_head_t"], params["b_head_t"], epst)

    action = packed[:action_dim, :batch].T                    # (batch, action_dim)
    log_prob = packed[action_dim:, :batch].T                  # (batch, action_dim)
    return action, log_prob


def _uniform_init(key, shape, fan_in):
    # Mirrors torch.nn.Linear default init bound (1/sqrt(fan_in)), deterministic.
    bound = 1.0 / float(fan_in) ** 0.5
    return jax.random.uniform(key, shape, jnp.float32, -bound, bound)


if __name__ == "__main__":
    # Pendulum-v1: state_dim=3, action_dim=1, action_bound=2.0; hidden_dim=128.
    state_dim, hidden_dim, action_dim = 3, 128, 1
    action_bound = 2.0
    batch = 200          # pads to 256; with block_batch=128 -> 2-step batch grid

    key = jax.random.PRNGKey(0)
    keys = jax.random.split(key, 8)

    w1 = _uniform_init(keys[0], (state_dim, hidden_dim), state_dim)
    b1 = _uniform_init(keys[1], (1, hidden_dim), state_dim)
    wmu = _uniform_init(keys[2], (hidden_dim, action_dim), hidden_dim)
    bmu = _uniform_init(keys[3], (1, action_dim), hidden_dim)
    wstd = _uniform_init(keys[4], (hidden_dim, action_dim), hidden_dim)
    bstd = _uniform_init(keys[5], (1, action_dim), hidden_dim)
    params = fuse_params(w1, b1, wmu, bmu, wstd, bstd)

    x = jax.random.normal(keys[6], (batch, state_dim), jnp.float32)
    eps = jax.random.normal(keys[7], (batch, action_dim), jnp.float32)

    action, log_prob = policy_net_continuous(x, params, eps, action_bound,
                                             block_batch=128)
    jax.block_until_ready((action, log_prob))

    # Pure-JAX reference (same math as the PyTorch module, incl. double tanh).
    h = jnp.maximum(x @ w1 + b1, 0.0)
    mu = h @ wmu + bmu
    pre = h @ wstd + bstd
    std = jnp.logaddexp(pre, 0.0)               # softplus
    ref_lp = (-0.5 * jnp.square(eps) - jnp.log(std) - 0.5 * jnp.log(2.0 * jnp.pi))
    ref_act = jnp.tanh(mu + std * eps)
    ref_lp = ref_lp - jnp.log(1.0 - jnp.square(jnp.tanh(ref_act)) + 1e-7)
    ref_act = ref_act * action_bound

    assert action.shape == (batch, action_dim)
    assert log_prob.shape == (batch, action_dim)
    assert jnp.allclose(action, ref_act, atol=1e-4, rtol=1e-4)
    assert jnp.allclose(log_prob, ref_lp, atol=1e-4, rtol=1e-4)
    print("KERNEL_OK")
</pallas_src>

<mosaic_0001>
module attributes {stable_mosaic.version = 11 : i64} {
  func.func @_policy_kernel(%arg0: i32, %arg1: memref<3x128xf32, #tpu.memory_space<vmem>>, %arg2: memref<128x3xf32, #tpu.memory_space<vmem>>, %arg3: memref<128x1xf32, #tpu.memory_space<vmem>>, %arg4: memref<2x128xf32, #tpu.memory_space<vmem>>, %arg5: memref<2x1xf32, #tpu.memory_space<vmem>>, %arg6: memref<1x128xf32, #tpu.memory_space<vmem>>, %arg7: memref<2x128xf32, #tpu.memory_space<vmem>>) attributes {dimension_semantics = [#tpu.dimension_semantics<parallel>], iteration_bounds = array<i64: 2>, scalar_prefetch = 0 : i64, scratch_operands = 0 : i64, tpu.core_type = #tpu.core_type<tc>, window_params = [{transform_indices = @transform_0, window_bounds = array<i64: 3, 128>}, {pipeline_mode = #tpu.pipeline_mode<synchronous>, transform_indices = @transform_1, window_bounds = array<i64: 128, 3>}, {pipeline_mode = #tpu.pipeline_mode<synchronous>, transform_indices = @transform_2, window_bounds = array<i64: 128, 1>}, {pipeline_mode = #tpu.pipeline_mode<synchronous>, transform_indices = @transform_3, window_bounds = array<i64: 2, 128>}, {pipeline_mode = #tpu.pipeline_mode<synchronous>, transform_indices = @transform_4, window_bounds = array<i64: 2, 1>}, {transform_indices = @transform_5, window_bounds = array<i64: 1, 128>}, {transform_indices = @transform_6, window_bounds = array<i64: 2, 128>}]} {
    %c0 = arith.constant 0 : index
    %c0_0 = arith.constant 0 : index
    %0 = vector.load %arg2[%c0, %c0_0] : memref<128x3xf32, #tpu.memory_space<vmem>>, vector<128x3xf32>
    %c0_1 = arith.constant 0 : index
    %c0_2 = arith.constant 0 : index
    %1 = vector.load %arg1[%c0_1, %c0_2] : memref<3x128xf32, #tpu.memory_space<vmem>>, vector<3x128xf32>
    %cst = arith.constant dense<0.000000e+00> : vector<128x128xf32>
    %2 = tpu.matmul %0, %1, %cst {dimension_numbers = #tpu.dot_dimension_numbers<[1], [0], [0], [1], [0, 0, 1, 1], [], []>} : vector<128x3xf32>, vector<3x128xf32>, vector<128x128xf32> -> vector<128x128xf32>
    %c0_3 = arith.constant 0 : index
    %c0_4 = arith.constant 0 : index
    %3 = vector.load %arg3[%c0_3, %c0_4] : memref<128x1xf32, #tpu.memory_space<vmem>>, vector<128x1xf32>
    %4 = vector.broadcast %3 : vector<128x1xf32> to vector<128x128xf32>
    %5 = arith.addf %2, %4 : vector<128x128xf32>
    %cst_5 = arith.constant 0.000000e+00 : f32
    %6 = vector.broadcast %cst_5 : f32 to vector<128x128xf32>
    %7 = arith.maximumf %5, %6 : vector<128x128xf32>
    %c0_6 = arith.constant 0 : index
    %c0_7 = arith.constant 0 : index
    %8 = vector.load %arg4[%c0_6, %c0_7] : memref<2x128xf32, #tpu.memory_space<vmem>>, vector<2x128xf32>
    %cst_8 = arith.constant dense<0.000000e+00> : vector<2x128xf32>
    %9 = tpu.matmul %8, %7, %cst_8 {dimension_numbers = #tpu.dot_dimension_numbers<[1], [0], [0], [1], [0, 0, 1, 1], [], []>} : vector<2x128xf32>, vector<128x128xf32>, vector<2x128xf32> -> vector<2x128xf32>
    %c0_9 = arith.constant 0 : index
    %c0_10 = arith.constant 0 : index
    %10 = vector.load %arg5[%c0_9, %c0_10] : memref<2x1xf32, #tpu.memory_space<vmem>>, vector<2x1xf32>
    %11 = vector.broadcast %10 : vector<2x1xf32> to vector<2x128xf32>
    %12 = arith.addf %9, %11 : vector<2x128xf32>
    %13 = vector.extract_strided_slice %12 {offsets = [0, 0], sizes = [1, 128], strides = [1, 1]} : vector<2x128xf32> to vector<1x128xf32>
    %14 = vector.extract_strided_slice %12 {offsets = [1, 0], sizes = [1, 128], strides = [1, 1]} : vector<2x128xf32> to vector<1x128xf32>
    %cst_11 = arith.constant 0.000000e+00 : f32
    %15 = vector.broadcast %cst_11 : f32 to vector<1x128xf32>
    %16 = arith.maximumf %14, %15 : vector<1x128xf32>
    %17 = math.absf %14 : vector<1x128xf32>
    %cst_12 = arith.constant 0.000000e+00 : f32
    %18 = vector.broadcast %cst_12 : f32 to vector<1x128xf32>
    %19 = arith.subf %18, %17 : vector<1x128xf32>
    %20 = math.exp %19 : vector<1x128xf32>
    %21 = math.log1p %20 : vector<1x128xf32>
    %22 = arith.addf %16, %21 : vector<1x128xf32>
    %c0_13 = arith.constant 0 : index
    %c0_14 = arith.constant 0 : index
    %23 = vector.load %arg6[%c0_13, %c0_14] : memref<1x128xf32, #tpu.memory_space<vmem>>, vector<1x128xf32>
    %24 = arith.mulf %22, %23 : vector<1x128xf32>
    %25 = arith.addf %13, %24 : vector<1x128xf32>
    %26 = arith.mulf %23, %23 : vector<1x128xf32>
    %cst_15 = arith.constant -5.000000e-01 : f32
    %27 = vector.broadcast %cst_15 : f32 to vector<1x128xf32>
    %28 = arith.mulf %27, %26 : vector<1x128xf32>
    %29 = math.log %22 : vector<1x128xf32>
    %30 = arith.subf %28, %29 : vector<1x128xf32>
    %cst_16 = arith.constant 6.28318548 : f32
    %31 = math.log %cst_16 : f32
    %cst_17 = arith.constant 5.000000e-01 : f32
    %32 = arith.mulf %cst_17, %31 : f32
    %33 = vector.broadcast %32 : f32 to vector<1x128xf32>
    %34 = arith.subf %30, %33 : vector<1x128xf32>
    %35 = math.tanh %25 : vector<1x128xf32>
    %36 = math.tanh %35 : vector<1x128xf32>
    %37 = arith.mulf %36, %36 : vector<1x128xf32>
    %cst_18 = arith.constant 1.000000e+00 : f32
    %38 = vector.broadcast %cst_18 : f32 to vector<1x128xf32>
    %39 = arith.subf %38, %37 : vector<1x128xf32>
    %cst_19 = arith.constant 1.000000e-07 : f32
    %40 = vector.broadcast %cst_19 : f32 to vector<1x128xf32>
    %41 = arith.addf %39, %40 : vector<1x128xf32>
    %42 = math.log %41 : vector<1x128xf32>
    %43 = arith.subf %34, %42 : vector<1x128xf32>
    %cst_20 = arith.constant 2.000000e+00 : f32
    %44 = vector.broadcast %cst_20 : f32 to vector<1x128xf32>
    %45 = arith.mulf %35, %44 : vector<1x128xf32>
    %c0_21 = arith.constant 0 : index
    %c0_22 = arith.constant 0 : index
    %46 = vector.load %arg7[%c0_21, %c0_22] : memref<2x128xf32, #tpu.memory_space<vmem>>, vector<1x128xf32>
    tpu.vector_store %arg7[%c0_21, %c0_22], %45 {strides = array<i32>} : memref<2x128xf32, #tpu.memory_space<vmem>>, vector<1x128xf32>,
    %c1 = arith.constant 1 : index
    %c0_23 = arith.constant 0 : index
    %47 = vector.load %arg7[%c1, %c0_23] : memref<2x128xf32, #tpu.memory_space<vmem>>, vector<1x128xf32>
    tpu.vector_store %arg7[%c1, %c0_23], %43 {strides = array<i32>} : memref<2x128xf32, #tpu.memory_space<vmem>>, vector<1x128xf32>,
    return
  }
  func.func @transform_0(%arg0: i32) -> (i32, i32) {
    %c0_i32 = arith.constant 0 : i32
    %c0_i32_0 = arith.constant 0 : i32
    return %c0_i32, %arg0 : i32, i32
  }
  func.func @transform_1(%arg0: i32) -> (i32, i32) {
    %c0_i32 = arith.constant 0 : i32
    %c0_i32_0 = arith.constant 0 : i32
    %c0_i32_1 = arith.constant 0 : i32
    return %c0_i32, %c0_i32_0 : i32, i32
  }
  func.func @transform_2(%arg0: i32) -> (i32, i32) {
    %c0_i32 = arith.constant 0 : i32
    %c0_i32_0 = arith.constant 0 : i32
    %c0_i32_1 = arith.constant 0 : i32
    return %c0_i32, %c0_i32_0 : i32, i32
  }
  func.func @transform_3(%arg0: i32) -> (i32, i32) {
    %c0_i32 = arith.constant 0 : i32
    %c0_i32_0 = arith.constant 0 : i32
    %c0_i32_1 = arith.constant 0 : i32
    return %c0_i32, %c0_i32_0 : i32, i32
  }
  func.func @transform_4(%arg0: i32) -> (i32, i32) {
    %c0_i32 = arith.constant 0 : i32
    %c0_i32_0 = arith.constant 0 : i32
    %c0_i32_1 = arith.constant 0 : i32
    return %c0_i32, %c0_i32_0 : i32, i32
  }
  func.func @transform_5(%arg0: i32) -> (i32, i32) {
    %c0_i32 = arith.constant 0 : i32
    %c0_i32_0 = arith.constant 0 : i32
    return %c0_i32, %arg0 : i32, i32
  }
  func.func @transform_6(%arg0: i32) -> (i32, i32) {
    %c0_i32 = arith.constant 0 : i32
    %c0_i32_0 = arith.constant 0 : i32
    return %c0_i32, %arg0 : i32, i32
  }
}

</mosaic_0001>

<bundles_post_ra>
// kernel: tpu_custom_call.1
= control target key start
LH: loop header
LB: loop body
LE: loop exit
PB: predicated region body
PF: predicated region fallthrough
CT: control target
= control target key end

     0   :  { %11 = vsyncpa [#allocation3], 0  ;;  %s1335_s0 = inlined_call_operand.vmem [shape: f32[3,256], index: 0, kind: input, shape index: {}]   ;;  %s1336_s1 = inlined_call_operand.vmem [shape: f32[128,3], index: 1, kind: input, shape index: {}]   ;;  %s1337_s2 = inlined_call_operand.vmem [shape: f32[128,1], index: 2, kind: input, shape index: {}]   ;;  %s1338_s3 = inlined_call_operand.vmem [shape: f32[2,128], index: 3, kind: input, shape index: {}]   ;;  %s1339_s4 = inlined_call_operand.vmem [shape: f32[2,1], index: 4, kind: input, shape index: {}]   ;;  %s1340_s5 = inlined_call_operand.vmem [shape: f32[1,256], index: 5, kind: input, shape index: {}]   ;;  %s1341_s6 = inlined_call_operand.hbm [shape: f32[2,256], index: 6, kind: output, shape index: {}]  }
   0x1   :  { %13 = vsyncpa [#allocation3 + $0x1], 0  ;;  %s1090_s21 = smov 0   ;;  %s1092_s22 = smov 0  }
   0x2   :  { %s1094_s23 = smov 0   ;;  %s1096_s24 = smov 0  }
   0x3 LB: > { %s1111_s25 = sadd.s32 4294967295, %s1048_s24   ;;  %s808_s26 = sadd.s32 4294967294, %s1048_s24   ;;  %s1048_s24 = sphi %s1096_s24, %s1347_s24   ;;  %s1044_s23 = sphi %s1094_s23, %s1346_s23   ;;  %s1040_s22 = sphi %s1092_s22, %s1345_s22   ;;  %s1036_s21 = sphi %s1090_s21, %s1344_s21  }
   0x4   : > { %s1115_s27 = sadd.s32 1, %s1048_s24   ;;  %s162_s28 = sadd.s32 1, %s1044_s23 }
   0x5   : > { %s159_s29 = ssub.s32 %s1048_s24, %s1115_s27  ;;  %p172_p0 = scmp.ne.s32.totalorder %s1044_s23, %s1040_s22 }
   0x6   : > { %p160_p1 = scmp.eq.s32.totalorder %s159_s29, 0  ;;  %p173_p2 = scmp.eq.s32.totalorder %s1111_s25, 1 }
   0x7   : > { %p178_p3 = scmp.ne.s32.totalorder %s1040_s22, %s1036_s21  ;;  %p179_p4 = scmp.eq.s32.totalorder %s808_s26, 1 }
   0x8   : > { %s1126_s30 = scalar_select %p160_p1, %s1044_s23, %s162_s28  }
   0x9   : > { %p1128_p5 = por %p173_p2, %p172_p0  ;;  %p1132_p6 = por %p179_p4, %p178_p3 }
   0xa   : > { %p811_p7 = scmp.ge.s32.totalorder %s1048_s24, 1  ;;  %p222_p8 = scmp.lt.s32.totalorder %s1048_s24, 3 }
   0xc   : > { %p223_p9 = pnand %p811_p7, %p222_p8 }
   0xd   : > { %p254_p10 = scmp.lt.s32.totalorder (!%p223_p9), %s1111_s25, 1  ;;  %s833_s17 = sshll.u32 (!%p223_p9), %s1111_s25, 5 }
   0xe   : > { %226 = sbr.rel (%p223_p9) target bundleno = 589 (0x24d), region = 44  ;;  %s738_s26 = scalar_lea.hbm (!%p223_p9), %s1341_s6, %s833_s17 }
   0xf   : > { %s1054_s9 = smov (!%p223_p9), [#allocation2]  }
  0x10   : > { %s992_s10 = sshll.u32 (!%p223_p9), %s1054_s9, 4  ;;  %s993_s10 = int_to_ptr.vmem [resolvable:$false] %s992_s10 }
  0x13   : > { %v261_v0 = vld [vmem:[%s1336_s1] sm:$0xff]  ;;  %vm374_vm0 = vcmask 23552   ;;  %s1144_s11 = scalar_select %p254_p10, %s1111_s25, 1  ;;  %v1050_v1 = vmov 0   ;;  %vm423_vm1 = vcmask 1042432   ;;  %v262_v3 = vld [vmem:[%s1336_s1 + $0x8] sm:$0xff] }
  0x14   : > { %872 = vmatprep.mubr.msk.f32.mxu0 %vm374_vm0, %v261_v0  ;;  %974 = vset.pattern.permute.xlu0 %v1050_v1  ;;  %v293_v4 = vld [vmem:[%s1337_s2 + $0x78] sm:$0xff]  ;;  %v263_v5 = vld [vmem:[%s1336_s1 + $0x10] sm:$0xff]  ;;  %v291_v6 = vld [vmem:[%s1337_s2 + $0x68] sm:$0xff]  ;;  %v1051_v35 = vmov 0.0   ;;  %vm1052_vm2 = vmmov 0   ;;  %s994_s25 = scalar_lea.vmem %s993_s10, 64 }
  0x15   : > { %975 = vset.pattern.permute.xlu1 %v1050_v1  ;;  %s813_s12 = sshll.u32 %s1144_s11, 2  ;;  %371 = vperm.xlu0 %974, %v293_v4   ;;  %v292_v7 = vld [vmem:[%s1337_s2 + $0x70] sm:$0xff]  ;;  %v290_v8 = vld [vmem:[%s1337_s2 + $0x60] sm:$0xff]  ;;  %v264_v9 = vld [vmem:[%s1336_s1 + $0x18] sm:$0xff]  ;;  %s260_s14 = scalar_lea.vmem %s1340_s5, %s1144_s11 }
  0x16   : > { %s257_s15 = scalar_lea.vmem %s1335_s0, %s813_s12  ;;  %361 = vperm.xlu1 %975, %v291_v6   ;;  %v265_v10 = vld [vmem:[%s1336_s1 + $0x20] sm:$0xff]  ;;  %v289_v11 = vld [vmem:[%s1337_s2 + $0x58] sm:$0xff]  ;;  %v288_v12 = vld [vmem:[%s1337_s2 + $0x50] sm:$0xff]  ;;  %896 = vmatprep.subr.mxu1 %v1051_v35 }
  0x17   : > { %v277_v2 = vld [vmem:[%s257_s15] sm:$0x7]  ;;  %v266_v13 = vld [vmem:[%s1336_s1 + $0x28] sm:$0xff]  ;;  %v267_v14 = vld [vmem:[%s1336_s1 + $0x30] sm:$0xff]  ;;  %928 = vmatprep.mubr.msk.f32.mxu1 %vm1052_vm2, %v1051_v35  ;;  %s251_s15 = sand.u32 1, %s1040_s22  }
  0x18   : > { %870 = vmatprep.subr.msk.mxu0 %vm423_vm1, %v277_v2  ;;  %v287_v15 = vld [vmem:[%s1337_s2 + $0x48] sm:$0xff]  ;;  %v286_v16 = vld [vmem:[%s1337_s2 + $0x40] sm:$0xff]  ;;  %v268_v17 = vld [vmem:[%s1336_s1 + $0x38] sm:$0xff]  ;;  %s812_s11 = sshll.u32 %s251_s15, 1  ;;  %s727_s28 = scalar_lea.sflag [#allocation3], %s251_s15 }
  0x19   : > { %871 = vmatpush3.msk.msra.mxu0 %vm423_vm1, %v277_v2  ;;  %366 = vperm.xlu0 %974, %v292_v7   ;;  %v269_v18 = vld [vmem:[%s1336_s1 + $0x40] sm:$0xff]  ;;  %v285_v19 = vld [vmem:[%s1337_s2 + $0x38] sm:$0xff]  ;;  %v284_v20 = vld [vmem:[%s1337_s2 + $0x30] sm:$0xff]  ;;  %s253_s16 = scalar_lea.vmem [#allocation2], %s812_s11 }
  0x1a   : > { %873 = vmatmul.mubr.msk.f32.vlgmr.msra.gmra.mxu0 %vm374_vm0, %v262_v3  ;;  %356 = vperm.xlu1 %975, %v290_v8   ;;  %v270_v21 = vld [vmem:[%s1336_s1 + $0x48] sm:$0xff]  ;;  %v271_v22 = vld [vmem:[%s1336_s1 + $0x50] sm:$0xff]  ;;  %v282_v24 = vld [vmem:[%s1337_s2 + $0x20] sm:$0xff]  ;;  %s740_s18 = sshll.u32 %s253_s16, 4  ;;  %s741_s18 = int_to_ptr.vmem [resolvable:$true] %s740_s18 }
  0x1b   : > { %875 = vmatprep.mubr.msk.f32.mxu0 %vm374_vm0, %v263_v5  ;;  %v283_v23 = vld [vmem:[%s1337_s2 + $0x28] sm:$0xff]  ;;  %v272_v25 = vld [vmem:[%s1336_s1 + $0x58] sm:$0xff]  ;;  %v273_v26 = vld [vmem:[%s1336_s1 + $0x60] sm:$0xff]  ;;  %s988_s29 = scalar_lea.vmem %s741_s18, 32  ;;  %p995_p0 = scmp.lt.s32.totalorder %s741_s18, %s993_s10 }
  0x1c   : > { %v281_v27 = vld [vmem:[%s1337_s2 + $0x18] sm:$0xff]  ;;  %v280_v28 = vld [vmem:[%s1337_s2 + $0x10] sm:$0xff]  ;;  %v274_v29 = vld [vmem:[%s1336_s1 + $0x68] sm:$0xff]  ;;  %p989_p11 = scmp.ne.s32.totalorder %s741_s18, %s988_s29  ;;  %p996_p1 = scmp.lt.s32.totalorder %s994_s25, %s988_s29 }
  0x1d   : > { %351 = vperm.xlu0 %974, %v289_v11   ;;  %v275_v30 = vld [vmem:[%s1336_s1 + $0x70] sm:$0xff]  ;;  %v279_v31 = vld [vmem:[%s1337_s2 + $0x8] sm:$0xff]  ;;  %v278_v32 = vld [vmem:[%s1337_s2] sm:$0xff] }
  0x1e   : > { %876 = vmatmul.mubr.msk.f32.gmra.mxu0 %vm374_vm0, %v264_v9  ;;  %346 = vperm.xlu1 %975, %v288_v12   ;;  %v276_v33 = vld [vmem:[%s1336_s1 + $0x78] sm:$0xff]  ;;  %v589_v34 = vld [vmem:[%s1339_s4] sm:$0x3]  ;;  %p990_p12 = pnand %p989_p11, %p1128_p5  ;;  %p997_p2 = por %p996_p1, %p995_p0 }
  0x1f   : > { %878 = vmatprep.mubr.msk.f32.mxu0 %vm374_vm0, %v265_v10 }
  0x20   : > { %p991_p13 = pneg %p990_p12 }
  0x21   : > { %341 = vperm.xlu0 %974, %v287_v15  }
  0x22   : > { %879 = vmatmul.mubr.msk.f32.gmra.mxu0 %vm374_vm0, %v266_v13  ;;  %336 = vperm.xlu1 %975, %v286_v16   ;;  %p998_p3 = pnand %p997_p2, %p991_p13 }
  0x23   : > { %881 = vmatprep.mubr.msk.f32.mxu0 %vm374_vm0, %v267_v14 }
  0x25   : > { %331 = vperm.xlu0 %974, %v285_v19  }
  0x26   : > { %882 = vmatmul.mubr.msk.f32.gmra.mxu0 %vm374_vm0, %v268_v17  ;;  %326 = vperm.xlu1 %975, %v284_v20  }
  0x27   : > { %884 = vmatprep.mubr.msk.f32.mxu0 %vm374_vm0, %v269_v18 }
  0x29   : > { %321 = vperm.xlu0 %974, %v283_v23  }
  0x2a   : > { %885 = vmatmul.mubr.msk.f32.gmra.mxu0 %vm374_vm0, %v270_v21  ;;  %316 = vperm.xlu1 %975, %v282_v24  }
  0x2b   : > { %887 = vmatprep.mubr.msk.f32.mxu0 %vm374_vm0, %v271_v22 }
  0x2d   : > { %311 = vperm.xlu0 %974, %v281_v27  }
  0x2e   : > { %888 = vmatmul.mubr.msk.f32.gmra.mxu0 %vm374_vm0, %v272_v25  ;;  %306 = vperm.xlu1 %975, %v280_v28  }
  0x2f   : > { %890 = vmatprep.mubr.msk.f32.mxu0 %vm374_vm0, %v273_v26 }
  0x31   : > { %301 = vperm.xlu0 %974, %v279_v31  }
  0x32   : > { %891 = vmatmul.mubr.msk.f32.gmra.mxu0 %vm374_vm0, %v274_v29  ;;  %296 = vperm.xlu1 %975, %v278_v32  }
  0x33   : > { %893 = vmatprep.mubr.msk.f32.mxu0 %vm374_vm0, %v275_v30 }
  0x35   : > { %592 = vperm.xlu0 %974, %v589_v34  }
  0x36   : > { %894 = vmatmul.mubr.msk.f32.gmra.mxu0 %vm374_vm0, %v276_v33 }
  0x90   : > { %v372_v41 = vpop.permute.xlu0 %371 }
  0x91   : > { %v362_v43 = vpop.permute.xlu1 %361 }
  0x94   : > { %v367_v46 = vpop.permute.xlu0 %366 }
  0x95   : > { %v357_v48 = vpop.permute.xlu1 %356 }
  0x98   : > { %v352_v51 = vpop.permute.xlu0 %351 }
  0x99   : > { %v347_v53 = vpop.permute.xlu1 %346 }
  0x9c   : > { %v342_v56 = vpop.permute.xlu0 %341 }
  0x9d   : > { %v337_v59 = vpop.permute.xlu1 %336 }
  0xa0   : > { %v332_v2 = vpop.permute.xlu0 %331 }
  0xa1   : > { %v327_v5 = vpop.permute.xlu1 %326 }
  0xa4   : > { %v322_v10 = vpop.permute.xlu0 %321 }
  0xa5   : > { %v317_v13 = vpop.permute.xlu1 %316 }
  0xa8   : > { %v312_v18 = vpop.permute.xlu0 %311 }
  0xa9   : > { %v307_v21 = vpop.permute.xlu1 %306 }
  0xac   : > { %v302_v26 = vpop.permute.xlu0 %301 }
  0xad   : > { %v297_v29 = vpop.permute.xlu1 %296 }
  0xda   : > { %v1263_v36 = vpop.f32.mrf.mxu0 }
  0xdb   : > { %v499_v30 = vadd.f32 %v1263_v36, %v302_v26  ;;  %v588_v36 = vld [vmem:[%s1338_s3] sm:$0x3] }
  0xdc   : > { %v1265_v37 = vpop.f32.mrf.mxu0 }
  0xdd   : > { %v494_v32 = vadd.f32 %v1265_v37, %v297_v29  ;;  %v573_v34 = vmax.f32 %v499_v30, 0.0  ;;  %v593_v37 = vpop.permute.xlu0 %592 }
  0xde   : > { %v1267_v38 = vpop.f32.mrf.mxu0 }
  0xdf   : > { %v509_v24 = vadd.f32 %v1267_v38, %v312_v18  ;;  %v572_v38 = vmax.f32 %v494_v32, 0.0 }
  0xe0   : > { %v1269_v39 = vpop.f32.mrf.mxu0 }
  0xe1   : > { %v504_v27 = vadd.f32 %v1269_v39, %v307_v21  ;;  %v575_v31 = vmax.f32 %v509_v24, 0.0 }
  0xe2   : > { %v880_v40 = vpop.f32.mrf.mxu0 }
  0xe3   : > { %v519_v19 = vadd.f32 %v880_v40, %v322_v10  ;;  %v574_v33 = vmax.f32 %v504_v27, 0.0 }
  0xe4   : > { %v513_v42 = vpop.f32.mrf.mxu0 }
  0xe5   : > { %v514_v22 = vadd.f32 %v513_v42, %v317_v13  ;;  %v577_v25 = vmax.f32 %v519_v19, 0.0 }
  0xe6   : > { %v883_v44 = vpop.f32.mrf.mxu0 }
  0xe7   : > { %v529_v14 = vadd.f32 %v883_v44, %v332_v2  ;;  %v576_v28 = vmax.f32 %v514_v22, 0.0 }
  0xe8   : > { %v523_v45 = vpop.f32.mrf.mxu0 }
  0xe9   : > { %v524_v16 = vadd.f32 %v523_v45, %v327_v5  ;;  %v579_v20 = vmax.f32 %v529_v14, 0.0 }
  0xea   : > { %v886_v47 = vpop.f32.mrf.mxu0 }
  0xeb   : > { %v539_v8 = vadd.f32 %v886_v47, %v342_v56  ;;  %v578_v23 = vmax.f32 %v524_v16, 0.0  ;;  %v682_v47 = vlaneseq }
  0xec   : > { %v533_v49 = vpop.f32.mrf.mxu0 }
  0xed   : > { %v534_v11 = vadd.f32 %v533_v49, %v337_v59  ;;  %v581_v15 = vmax.f32 %v539_v8, 0.0  ;;  %v683_v49 = vshrl.u32 %v682_v47, 7 }
  0xee   : > { %v889_v50 = vpop.f32.mrf.mxu0 }
  0xef   : > { %v549_v3 = vadd.f32 %v889_v50, %v352_v51  ;;  %v580_v17 = vmax.f32 %v534_v11, 0.0  ;;  %v684_v50 = vsub.s32 0, %v683_v49 }
  0xf0   : > { %v543_v52 = vpop.f32.mrf.mxu0 }
  0xf1   : > { %v544_v6 = vadd.f32 %v543_v52, %v347_v53  ;;  %v583_v9 = vmax.f32 %v549_v3, 0.0  ;;  %v680_v52 = vld [vmem:[%s260_s14] sm:$0x1] }
  0xf2   : > { %v892_v54 = vpop.f32.mrf.mxu0  ;;  %v685_v56 = vrot.slane %v680_v52, %v684_v50 }
  0xf3   : > { %v559_v61 = vadd.f32 %v892_v54, %v362_v43  ;;  %v582_v12 = vmax.f32 %v544_v6, 0.0 }
  0xf4   : > { %v553_v55 = vpop.f32.mrf.mxu0 }
  0xf5   : > { %v554_v0 = vadd.f32 %v553_v55, %v357_v48  ;;  %v585_v4 = vmax.f32 %v559_v61, 0.0 }
  0xf6   : > { %v895_v57 = vpop.f32.mrf.mxu0 }
  0xf7   : > { %v569_v58 = vadd.f32 %v895_v57, %v372_v41  ;;  %v584_v7 = vmax.f32 %v554_v0, 0.0 }
  0xf8   : > { %v563_v60 = vpop.f32.mrf.mxu0 }
  0xf9   : > { %v587_v62 = vmax.f32 %v569_v58, 0.0  ;;  %v564_v63 = vadd.f32 %v563_v60, %v367_v46 }
  0xfb   : > { %v586_v1 = vmax.f32 %v564_v63, 0.0  ;;  %897 = vmatpush3.msra.mxu1 %v587_v62 }
  0xfc   : > { %898 = vmatprep.subr.mxu1 %v1051_v35 }
  0xfd   : > { %899 = vmatpush3.msra.mxu1 %v586_v1  ;;  %v1053_v1 = vmov 1966171168  }
  0xfe   : > { %900 = vmatprep.subr.mxu1 %v1051_v35  ;;  %v698_v2 = vunpack.c.l.s4 %v1053_v1 }
  0xff   : > { %901 = vmatpush3.msra.mxu1 %v585_v4 }
 0x100   : > { %902 = vmatprep.subr.mxu1 %v1051_v35  ;;  %v699_v3 = vunpack.c.0.s8 %v698_v2 }
 0x101   : > { %903 = vmatpush3.msra.mxu1 %v584_v7 }
 0x102   : > { %904 = vmatprep.subr.mxu1 %v1051_v35  ;;  %v702_v6 = vsub.s32 %v699_v3, %v683_v49 }
 0x103   : > { %905 = vmatpush3.msra.mxu1 %v583_v9 }
 0x104   : > { %906 = vmatprep.subr.mxu1 %v1051_v35 }
 0x105   : > { %907 = vmatpush3.msra.mxu1 %v582_v12  ;;  %v692_v12 = vmul.f32 %v680_v52, %v680_v52 }
 0x106   : > { %908 = vmatprep.subr.mxu1 %v1051_v35 }
 0x107   : > { %909 = vmatpush3.msra.mxu1 %v581_v15  ;;  %v693_v14 = vmul.f32 -0.5, %v692_v12 }
 0x108   : > { %910 = vmatprep.subr.mxu1 %v1051_v35 }
 0x109   : > { %911 = vmatpush3.msra.mxu1 %v580_v17 }
 0x10a   : > { %912 = vmatprep.subr.mxu1 %v1051_v35 }
 0x10b   : > { %913 = vmatpush3.msra.mxu1 %v579_v20 }
 0x10c   : > { %914 = vmatprep.subr.mxu1 %v1051_v35 }
 0x10d   : > { %915 = vmatpush3.msra.mxu1 %v578_v23 }
 0x10e   : > { %916 = vmatprep.subr.mxu1 %v1051_v35 }
 0x10f   : > { %917 = vmatpush3.msra.mxu1 %v577_v25 }
 0x110   : > { %918 = vmatprep.subr.mxu1 %v1051_v35 }
 0x111   : > { %919 = vmatpush3.msra.mxu1 %v576_v28 }
 0x112   : > { %920 = vmatprep.subr.mxu1 %v1051_v35 }
 0x113   : > { %921 = vmatpush3.msra.mxu1 %v575_v31 }
 0x114   : > { %922 = vmatprep.subr.mxu1 %v1051_v35 }
 0x115   : > { %923 = vmatpush3.msra.mxu1 %v574_v33 }
 0x116   : > { %924 = vmatprep.subr.mxu1 %v1051_v35 }
 0x117   : > { %925 = vmatpush3.msra.mxu1 %v573_v34 }
 0x118   : > { %926 = vmatprep.subr.mxu1 %v1051_v35 }
 0x119   : > { %927 = vmatpush3.msra.mxu1 %v572_v38 }
 0x11a   : > { %929 = vmatmul.mubr.f32.vlgmr.msra.gmra.mxu1 %v588_v36 }
 0x1da   : > { %v661_v39 = vpop.f32.mrf.mxu1 }
 0x1db   : > { %v662_v40 = vadd.f32 %v661_v39, %v593_v37 }
 0x1dc   : > { %v930_v41 = vpop.f32.mrf.mxu1 }
 0x1dd   : > { %v666_v42 = vand.u32 2147483647, %v662_v40  ;;  %v665_v57 = vmax.f32 %v662_v40, 0.0 }
 0x1df   : > { %v667_v43 = vsub.f32 0.0, %v666_v42 }
 0x1e1   : > { %v668_v44 = vmul.f32 1.442695, %v667_v43 }
 0x1e3   : > { %976 = vpow2.f32 %v668_v44 }
 0x1f0   : > { %v977_v45 = vpop.eup %976 }
 0x1f1   : > { %v670_v46 = vadd.f32 1.0, %v977_v45  ;;  %v673_v48 = vmul.f32 -0.5, %v977_v45  ;;  %v676_v51 = vand.u32 2147483647, %v977_v45 }
 0x1f3   : > { %978 = vlog2.f32 %v670_v46  ;;  %v674_v35 = vadd.f32 1.0, %v673_v48  ;;  %vm677_vm3 = vcmp.lt.f32.partialorder %v676_v51, 0.0004427343 }
 0x1f5   : > { %v675_v55 = vmul.f32 %v977_v45, %v674_v35 }
 0x200   : > { %v979_v53 = vpop.eup %978 }
 0x201   : > { %v672_v54 = vmul.f32 0.6931472, %v979_v53 }
 0x203   : > { %v678_v58 = vsel %vm677_vm3, %v675_v55, %v672_v54 }
 0x204   : > { %v679_v59 = vadd.f32 %v678_v58, %v665_v57 }
 0x206   : > { %v687_v60 = vmul.f32 %v685_v56, %v679_v59 }
 0x208   : > { %v689_v61 = vrot.slane %v687_v60, 1 }
 0x20a   : > { %v691_v62 = vadd.f32 %v689_v61, %v662_v40 }
 0x20c   : > { %980 = vtanh.f32 %v691_v62 }
 0x20d   : > { %982 = vlog2.f32 %v679_v59 }
 0x219   : > { %v981_v63 = vpop.eup %980 }
 0x21a   : > { %984 = vtanh.f32 %v981_v63  ;;  %v723_v0 = vmul.f32 2.0, %v981_v63  ;;  %v983_v4 = vpop.eup %982 }
 0x21b   : > { %v695_v7 = vmul.f32 0.6931472, %v983_v4 }
 0x21c   : > { %724 = vst [vmem:[%s253_s16] sm:$0x1] %v723_v0 }
 0x21d   : > { %v703_v10 = vrot.slane %v695_v7, %v702_v6 }
 0x21f   : > { %v704_v13 = vcombine.high %v703_v10, %v703_v10 }
 0x221   : > { %v711_v15 = vrot.slane %v704_v13, %v702_v6 }
 0x223   : > { %v713_v16 = vsub.f32 %v693_v14, %v711_v15 }
 0x225   : > { %v831_v18 = vadd.f32 -0.9189385, %v713_v16 }
 0x227   : > { %v985_v5 = vpop.eup %984 }
 0x228   : > { %v717_v8 = vmul.f32 %v985_v5, %v985_v5 }
 0x22a   : > { %v718_v9 = vsub.f32 1.0, %v717_v8 }
 0x22c   : > { %v719_v11 = vadd.f32 1e-07, %v718_v9 }
 0x22e   : > { %986 = vlog2.f32 %v719_v11 }
 0x23b   : > { %v987_v17 = vpop.eup %986 }
 0x23c   : > { %v721_v19 = vmul.f32 0.6931472, %v987_v17 }
 0x23e   : > { %v722_v20 = vsub.f32 %v831_v18, %v721_v19 }
 0x240   : > { %725 = vst [vmem:[%s253_s16 + $0x1] sm:$0x1] %v722_v20 }
 0x241   : > { %1001 = shalt.err (!%p998_p3)
}
 0x242   : > { %s1002_s12 = scalar_lea.hbm %s738_s26, 32  ;;  %s1006_s15 = scalar_lea.hbm %s1341_s6, 64 }
 0x243   : > { %p1003_p4 = scmp.ne.s32.totalorder %s738_s26, %s1002_s12  ;;  %p1007_p9 = scmp.lt.s32.totalorder %s738_s26, %s1341_s6 }
 0x244   : > { %p1008_p10 = scmp.lt.s32.totalorder %s1006_s15, %s1002_s12 }
 0x245   : > { %p1004_p7 = pnand %p1003_p4, %p1128_p5 }
 0x246   : > { %p1009_p11 = por %p1008_p10, %p1007_p9 }
 0x247   : > { %p1005_p8 = pneg %p1004_p7 }
 0x249   : > { %p1010_p12 = pnand %p1009_p11, %p1005_p8 }
 0x24b   : > { %1013 = shalt.err (!%p1010_p12)
}
 0x24c   : > { %931 = dma.vmem_to_hbm [thread:$0]  (%p1128_p5), %s741_s18, 32, %s738_s26, %s727_s28  }
 0x24d PF: > { %p937_p13 = scmp.ge.s32.totalorder %s1048_s24, 2  ;;  %s752_s17 = sand.u32 1, %s1036_s21  }
 0x24e   : > { %s753_s19 = scalar_lea.sflag [#allocation3], %s752_s17 }
 0x24f   : > { %p934_p0 = pnand %p937_p13, %p1132_p6 }
 0x251   : > { %p935_p1 = pneg %p934_p0 }
 0x253   : > { %1031 = dma.done.wait (%p935_p1), %s753_s19, 32  }
 0x254   : > { %1033 = vsyncadd (%p935_p1), %s753_s19, 4294967264  ;;  %p16_p2 = scmp.ge.s32.totalorder %s1115_s27, 4   ;;  %s1344_s21 = smov %s1040_s22 }
 0x255   : > { %s1345_s22 = smov %s1044_s23  ;;  %s1346_s23 = smov %s1126_s30 }
 0x256   : > { %s1347_s24 = smov %s1115_s27  ;;  %18 = sbr.rel (!%p16_p2) target bundleno = 3 (0x3), region = 82 }
 0x25b   :  { %758 = vsyncpa [#allocation3], 1 }
 0x25c   :  { %760 = vsyncpa [#allocation3 + $0x1], 1 }

</bundles_post_ra>
